<compile_context>
chip_gen: v7x
topology: tpu7x:2x2x1
jax: 0.10.0
libtpu: 0.0.40
codegen_flags: <defaults>
</compile_context>

<pallas_src>
import jax
import jax.numpy as jnp
import numpy as np
from jax.experimental import pallas as pl
from jax.experimental.pallas import tpu as pltpu


def fractal_combine_kernel(x_ref, w_ref, m_ref, b_ref, out_ref, acc_ref):
    """One recursion node: out = bias + sum_h (x @ W[h]) @ M[h].

    Grid = (batch_blocks, heads); heads is the (innermost) reduction axis.
    """
    h = pl.program_id(1)

    @pl.when(h == 0)
    def _init():
        # Start the accumulator from the head_mixing bias broadcast over rows.
        acc_ref[...] = jnp.broadcast_to(b_ref[...], acc_ref.shape).astype(jnp.float32)

    # Head-h contribution: (x @ weights[h]) @ mix_w[:, h*D:(h+1)*D].T
    y = jnp.dot(x_ref[...], w_ref[0], preferred_element_type=jnp.float32)
    acc_ref[...] += jnp.dot(y, m_ref[0], preferred_element_type=jnp.float32)

    @pl.when(h == pl.num_programs(1) - 1)
    def _finalize():
        out_ref[...] = acc_ref[...].astype(out_ref.dtype)


def prepare_level_params(weights, mix_w, mix_b, level):
    """Rearrange torch-layout params for one recursion level (hoisted out of the hot path)."""
    w = weights[level]                                      # (H, D, D) per-head weights
    H, D, _ = w.shape
    # head_mixing is Linear(H*D, D): out = mh @ mix_w.T + mix_b, mix_w is (D, H*D).
    # Split per head and pre-transpose so contribution_h = (x @ w[h]) @ m[h].
    m = jnp.transpose(mix_w.reshape(D, H, D), (1, 2, 0))    # m[h] = mix_w[:, h*D:(h+1)*D].T
    return w, m, mix_b.reshape(1, D)


def fractal_combine(combined, w, m, b):
    B, D = combined.shape
    H = w.shape[0]
    bm = 256 if (B % 256 == 0) else B                       # batch-row block (parallel axis)
    assert B % bm == 0 and (bm % 8 == 0 or bm == B)

    cost = pl.CostEstimate(
        flops=4 * H * B * D * D,                            # two (bm,D)x(D,D) matmuls per head
        transcendentals=0,
        bytes_accessed=4 * (2 * B * D + 2 * H * D * D + D),
    )
    return pl.pallas_call(
        fractal_combine_kernel,
        out_shape=jax.ShapeDtypeStruct((B, D), combined.dtype),
        grid_spec=pltpu.PrefetchScalarGridSpec(
            num_scalar_prefetch=0,
            grid=(B // bm, H),
            in_specs=[
                pl.BlockSpec((bm, D), lambda i, h: (i, 0)),       # x rows
                pl.BlockSpec((1, D, D), lambda i, h: (h, 0, 0)),  # per-head weight
                pl.BlockSpec((1, D, D), lambda i, h: (h, 0, 0)),  # per-head mixing slice
                pl.BlockSpec((1, D), lambda i, h: (0, 0)),        # head_mixing bias
            ],
            out_specs=pl.BlockSpec((bm, D), lambda i, h: (i, 0)),
            scratch_shapes=[pltpu.VMEM((bm, D), jnp.float32)],
        ),
        compiler_params=pltpu.CompilerParams(
            dimension_semantics=("parallel", "arbitrary")),
        cost_estimate=cost,
    )(combined, w, m, b)


def fractal_attention(x, weights, mix_w, mix_b, depth):
    """Mirrors FractalAttention.forward.  weights: (depth, H, D, D); mix_w: (D, H*D)."""
    # Weight rearrangement done once per level, outside the recursion.
    levels = [prepare_level_params(weights, mix_w, mix_b, lvl) for lvl in range(depth)]

    def apply(xx, d):
        if d == 0:
            return xx
        half = xx.shape[1] // 2
        left = apply(xx[:, :half], d - 1)
        right = apply(xx[:, half:], d - 1)
        combined = jnp.concatenate([left, right], axis=-1)
        w, m, b = levels[d - 1]
        # TODO(synk): depth >= 2 is shape-inconsistent in the reference torch module
        # (cat of two dim-wide outputs fed to a dim-wide per-head weight); mirror that.
        assert combined.shape[-1] == w.shape[-1], "FractalAttention only well-formed for depth <= 1"
        return fractal_combine(combined, w, m, b)

    return apply(x, depth)


if __name__ == "__main__":
    D = 128      # dim (feature width; lanes)
    H = 4        # heads
    DEPTH = 1    # the only depth > 0 at which the torch forward is shape-consistent
    B = 8        # rows (sublane-aligned)

    key = jax.random.PRNGKey(0)
    ks = jax.random.split(key, 4)
    x = jax.random.normal(ks[0], (B, D), dtype=jnp.float32)
    weights = jax.random.normal(ks[1], (DEPTH, H, D, D), dtype=jnp.float32)   # torch.randn
    lim = 1.0 / float(np.sqrt(D * H))
    mix_w = jax.random.uniform(ks[2], (D, D * H), jnp.float32, -lim, lim)     # Linear(D*H, D) weight (out, in)
    mix_b = jax.random.uniform(ks[3], (D,), jnp.float32, -lim, lim)

    out = fractal_attention(x, weights, mix_w, mix_b, DEPTH)
    out = jax.block_until_ready(out)

    # Pure-JAX reference mirroring the torch recursion exactly.
    def ref_apply(xx, d):
        if d == 0:
            return xx
        half = xx.shape[1] // 2
        left = ref_apply(xx[:, :half], d - 1)
        right = ref_apply(xx[:, half:], d - 1)
        combined = jnp.concatenate([left, right], axis=-1)
        multi = jnp.stack([combined @ weights[d - 1, i] for i in range(H)])       # (H, B, D)
        mh = jnp.transpose(multi, (1, 0, 2)).reshape(combined.shape[0], H * D)    # (B, H*D)
        return mh @ mix_w.T + mix_b

    ref = ref_apply(x, DEPTH)
    np.testing.assert_allclose(np.asarray(out), np.asarray(ref), atol=2e-2, rtol=2e-2)

    print("KERNEL_OK")
</pallas_src>

<mosaic_0001>
module attributes {stable_mosaic.version = 11 : i64} {
  func.func @fractal_combine_kernel(%arg0: i32, %arg1: i32, %arg2: memref<8x128xf32, #tpu.memory_space<vmem>>, %arg3: memref<1x128x128xf32, #tpu.memory_space<vmem>>, %arg4: memref<1x128x128xf32, #tpu.memory_space<vmem>>, %arg5: memref<1x128xf32, #tpu.memory_space<vmem>>, %arg6: memref<8x128xf32, #tpu.memory_space<vmem>>, %arg7: memref<8x128xf32, #tpu.memory_space<vmem>>) attributes {dimension_semantics = [#tpu.dimension_semantics<parallel>, #tpu.dimension_semantics<arbitrary>], iteration_bounds = array<i64: 1, 4>, scalar_prefetch = 0 : i64, scratch_operands = 1 : i64, tpu.core_type = #tpu.core_type<tc>, window_params = [{transform_indices = @transform_0, window_bounds = array<i64: 8, 128>}, {transform_indices = @transform_1, window_bounds = array<i64: 1, 128, 128>}, {transform_indices = @transform_2, window_bounds = array<i64: 1, 128, 128>}, {pipeline_mode = #tpu.pipeline_mode<synchronous>, transform_indices = @transform_3, window_bounds = array<i64: 1, 128>}, {transform_indices = @transform_4, window_bounds = array<i64: 8, 128>}]} {
    %c0_i32 = arith.constant 0 : i32
    %0 = arith.cmpi eq, %arg1, %c0_i32 : i32
    %1 = arith.extui %0 : i1 to i32
    %c0_i32_0 = arith.constant 0 : i32
    %2 = arith.cmpi ne, %1, %c0_i32_0 : i32
    scf.if %2 {
      %c0_14 = arith.constant 0 : index
      %c0_15 = arith.constant 0 : index
      %16 = vector.load %arg5[%c0_14, %c0_15] : memref<1x128xf32, #tpu.memory_space<vmem>>, vector<1x128xf32>
      %17 = vector.shape_cast %16 : vector<1x128xf32> to vector<1x128xf32>
      %18 = vector.broadcast %17 : vector<1x128xf32> to vector<8x128xf32>
      %c0_16 = arith.constant 0 : index
      %c0_17 = arith.constant 0 : index
      %19 = vector.load %arg7[%c0_16, %c0_17] : memref<8x128xf32, #tpu.memory_space<vmem>>, vector<8x128xf32>
      tpu.vector_store %arg7[%c0_16, %c0_17], %18 {strides = array<i32>} : memref<8x128xf32, #tpu.memory_space<vmem>>, vector<8x128xf32>,
    } else {
    }
    %c0 = arith.constant 0 : index
    %c0_1 = arith.constant 0 : index
    %3 = vector.load %arg2[%c0, %c0_1] : memref<8x128xf32, #tpu.memory_space<vmem>>, vector<8x128xf32>
    %c0_2 = arith.constant 0 : index
    %c0_3 = arith.constant 0 : index
    %c0_4 = arith.constant 0 : index
    %4 = vector.load %arg3[%c0_2, %c0_3, %c0_4] : memref<1x128x128xf32, #tpu.memory_space<vmem>>, vector<1x128x128xf32>
    %5 = vector.shape_cast %4 : vector<1x128x128xf32> to vector<128x128xf32>
    %cst = arith.constant dense<0.000000e+00> : vector<8x128xf32>
    %6 = tpu.matmul %3, %5, %cst {dimension_numbers = #tpu.dot_dimension_numbers<[1], [0], [0], [1], [0, 0, 1, 1], [], []>} : vector<8x128xf32>, vector<128x128xf32>, vector<8x128xf32> -> vector<8x128xf32>
    %c0_5 = arith.constant 0 : index
    %c0_6 = arith.constant 0 : index
    %7 = vector.load %arg7[%c0_5, %c0_6] : memref<8x128xf32, #tpu.memory_space<vmem>>, vector<8x128xf32>
    %c0_7 = arith.constant 0 : index
    %c0_8 = arith.constant 0 : index
    %c0_9 = arith.constant 0 : index
    %8 = vector.load %arg4[%c0_7, %c0_8, %c0_9] : memref<1x128x128xf32, #tpu.memory_space<vmem>>, vector<1x128x128xf32>
    %9 = vector.shape_cast %8 : vector<1x128x128xf32> to vector<128x128xf32>
    %cst_10 = arith.constant dense<0.000000e+00> : vector<8x128xf32>
    %10 = tpu.matmul %6, %9, %cst_10 {dimension_numbers = #tpu.dot_dimension_numbers<[1], [0], [0], [1], [0, 0, 1, 1], [], []>} : vector<8x128xf32>, vector<128x128xf32>, vector<8x128xf32> -> vector<8x128xf32>
    %11 = arith.addf %7, %10 : vector<8x128xf32>
    %c0_11 = arith.constant 0 : index
    %c0_12 = arith.constant 0 : index
    %12 = vector.load %arg7[%c0_11, %c0_12] : memref<8x128xf32, #tpu.memory_space<vmem>>, vector<8x128xf32>
    tpu.vector_store %arg7[%c0_11, %c0_12], %11 {strides = array<i32>} : memref<8x128xf32, #tpu.memory_space<vmem>>, vector<8x128xf32>,
    %c3_i32 = arith.constant 3 : i32
    %13 = arith.cmpi eq, %arg1, %c3_i32 : i32
    %14 = arith.extui %13 : i1 to i32
    %c0_i32_13 = arith.constant 0 : i32
    %15 = arith.cmpi ne, %14, %c0_i32_13 : i32
    scf.if %15 {
      %c0_14 = arith.constant 0 : index
      %c0_15 = arith.constant 0 : index
      %16 = vector.load %arg7[%c0_14, %c0_15] : memref<8x128xf32, #tpu.memory_space<vmem>>, vector<8x128xf32>
      %c0_16 = arith.constant 0 : index
      %c0_17 = arith.constant 0 : index
      %17 = vector.load %arg6[%c0_16, %c0_17] : memref<8x128xf32, #tpu.memory_space<vmem>>, vector<8x128xf32>
      tpu.vector_store %arg6[%c0_16, %c0_17], %16 {strides = array<i32>} : memref<8x128xf32, #tpu.memory_space<vmem>>, vector<8x128xf32>,
    } else {
    }
    return
  }
  func.func @transform_0(%arg0: i32, %arg1: i32) -> (i32, i32) {
    %c0_i32 = arith.constant 0 : i32
    %c0_i32_0 = arith.constant 0 : i32
    return %arg0, %c0_i32 : i32, i32
  }
  func.func @transform_1(%arg0: i32, %arg1: i32) -> (i32, i32, i32) {
    %c0_i32 = arith.constant 0 : i32
    %c0_i32_0 = arith.constant 0 : i32
    %c0_i32_1 = arith.constant 0 : i32
    return %arg1, %c0_i32, %c0_i32_0 : i32, i32, i32
  }
  func.func @transform_2(%arg0: i32, %arg1: i32) -> (i32, i32, i32) {
    %c0_i32 = arith.constant 0 : i32
    %c0_i32_0 = arith.constant 0 : i32
    %c0_i32_1 = arith.constant 0 : i32
    return %arg1, %c0_i32, %c0_i32_0 : i32, i32, i32
  }
  func.func @transform_3(%arg0: i32, %arg1: i32) -> (i32, i32) {
    %c0_i32 = arith.constant 0 : i32
    %c0_i32_0 = arith.constant 0 : i32
    %c0_i32_1 = arith.constant 0 : i32
    return %c0_i32, %c0_i32_0 : i32, i32
  }
  func.func @transform_4(%arg0: i32, %arg1: i32) -> (i32, i32) {
    %c0_i32 = arith.constant 0 : i32
    %c0_i32_0 = arith.constant 0 : i32
    return %arg0, %c0_i32 : i32, i32
  }
}

</mosaic_0001>

<bundles_post_ra>
// kernel: tpu_custom_call.1
= control target key start
LH: loop header
LB: loop body
LE: loop exit
PB: predicated region body
PF: predicated region fallthrough
CT: control target
= control target key end

     0   :  { %9 = vsyncpa [#allocation4], 0  ;;  %s1330_s0 = inlined_call_operand.hbm [shape: f32[8,128], index: 0, kind: input, shape index: {}]   ;;  %s1331_s1 = inlined_call_operand.hbm [shape: f32[4,128,128], index: 1, kind: input, shape index: {}]   ;;  %s1332_s2 = inlined_call_operand.hbm [shape: f32[4,128,128], index: 2, kind: input, shape index: {}]   ;;  %s1333_s3 = inlined_call_operand.vmem [shape: f32[1,128], index: 3, kind: input, shape index: {}]   ;;  %s1334_s4 = inlined_call_operand.hbm [shape: f32[8,128], index: 4, kind: output, shape index: {}]  }
   0x1   :  { %10 = vsyncpa [#allocation7], 0 }
   0x2   :  { %12 = vsyncpa [#allocation7 + $0x1], 0 }
   0x3   :  { %13 = vsyncpa [#allocation5], 0  ;;  %s1042_s15 = smov 0   ;;  %s1044_s16 = smov 0  }
   0x4   :  { %s1046_s17 = smov 0   ;;  %s1048_s18 = smov 0  }
   0x5   :  { %s1050_s19 = smov 0   ;;  %s1052_s20 = smov 0  }
   0x6 LB: > { %s28_s21 = sadd.s32 1, %s1002_s19  ;;  %s64_s22 = sadd.s32 1, %s994_s17  ;;  %s1006_s20 = sphi %s1052_s20, %s19_s20   ;;  %s1002_s19 = sphi %s1050_s19, %s1352_s19   ;;  %s998_s18 = sphi %s1048_s18, %s1351_s18   ;;  %s994_s17 = sphi %s1046_s17, %s1350_s17   ;;  %s990_s16 = sphi %s1044_s16, %s1349_s16   ;;  %s986_s15 = sphi %s1042_s15, %s1348_s15  }
   0x7   : > { %p29_p0 = scmp.ge.s32.totalorder %s28_s21, 4  ;;  %p71_p1 = scmp.ne.s32.totalorder %s994_s17, %s990_s16 }
   0x8   : > { %p72_p2 = scmp.eq.s32.totalorder %s1006_s20, 0  ;;  %p775_p4 = scmp.lt.s32.totalorder %s1006_s20, 4 }
   0x9   : > { %s1354_s21 = smov (%p29_p0, %s28_s21), 0  ;;  %s190_s24 = sand.u32 1, %s1006_s20  }
   0xa   : > { %p73_p3 = por %p72_p2, %p71_p1  ;;  %s61_s23 = ssub.s32 %s1002_s19, %s1354_s21 }
   0xb   : > { %p62_p5 = scmp.eq.s32.totalorder %s61_s23, 0  ;;  %s192_s25 = sand.u32 1, %s994_s17  }
   0xc   : > { %s597_s26 = sshll.u32 %s1002_s19, 11  ;;  %s1088_s28 = sshll.u32 %s192_s25, 7 }
   0xd   : > { %s1086_s27 = scalar_select %p62_p5, %s994_s17, %s64_s22  }
   0xe   : > { %s1095_s5 = scalar_lea.hbm %s1331_s1, %s597_s26  ;;  %p1097_p6 = pnand %p775_p4, %p73_p3 }
   0xf   : > { %s194_s7 = scalar_lea.vmem [#allocation6], %s1088_s28  ;;  %s1104_s9 = scalar_lea.sflag [#allocation7], %s190_s24 }
  0x10   : > { %s201_s8 = sshll.u32 %s194_s7, 4  ;;  %s834_s10 = scalar_lea.hbm %s1095_s5, 2048  ;;  %s1102_s8 = int_to_ptr.vmem [resolvable:$true] %s201_s8 }
  0x11   : > { %p835_p7 = scmp.ne.s32.totalorder %s1095_s5, %s834_s10  ;;  %p836_p8 = pneg %p1097_p6 }
  0x12   : > { %s839_s13 = scalar_lea.hbm %s1331_s1, 8192  ;;  %p840_p11 = scmp.lt.u32.totalorder %s1095_s5, %s1331_s1 }
  0x13   : > { %p837_p9 = pnand %p836_p8, %p835_p7  ;;  %p841_p12 = scmp.lt.u32.totalorder %s839_s13, %s834_s10 }
  0x14   : > { %p843_p0 = scmp.lt.u32.totalorder %s834_s10, %s1095_s5 }
  0x15   : > { %p838_p10 = pneg %p837_p9  ;;  %p842_p13 = por %p841_p12, %p840_p11 }
  0x17   : > { %p844_p1 = por %p843_p0, %p842_p13 }
  0x19   : > { %p845_p2 = pnand %p844_p1, %p838_p10 }
  0x1b   : > { %848 = shalt.err (!%p845_p2)
}
  0x1c   : > { %s849_s23 = scalar_lea.vmem %s1102_s8, 2048  ;;  %s1008_s24 = smov [#allocation6]  }
  0x1d   : > { %p850_p3 = scmp.ne.s32.totalorder %s1102_s8, %s849_s23  ;;  %s854_s25 = sshll.u32 %s1008_s24, 4  ;;  %s855_s25 = int_to_ptr.vmem [resolvable:$false] %s854_s25 }
  0x1e   : > { %s856_s29 = scalar_lea.vmem %s855_s25, 4096  ;;  %p857_p7 = scmp.lt.s32.totalorder %s1102_s8, %s855_s25 }
  0x1f   : > { %p852_p4 = pnand %p850_p3, %p836_p8  ;;  %p858_p9 = scmp.lt.s32.totalorder %s856_s29, %s849_s23 }
  0x21   : > { %p853_p5 = pneg %p852_p4  ;;  %p859_p11 = por %p858_p9, %p857_p7 }
  0x23   : > { %p860_p12 = pnand %p859_p11, %p853_p5 }
  0x25   : > { %863 = shalt.err (!%p860_p12)
}
  0x26   : > { %s1009_s30 = smov 128   ;;  %s1010_s7 = smov 8  }
  0x27   : > { %770 = dma.hbm_to_vmem [thread:$0]  (!%p1097_p6), %s1095_s5, 2048, %s1102_s8, %s1104_s9, %s1009_s30, %s1009_s30, %s1010_s7  }
  0x28   : > { %s1140_s12 = scalar_lea.hbm %s1332_s2, %s597_s26  ;;  %s215_s13 = scalar_lea.vmem [#allocation8], %s1088_s28 }
  0x29   : > { %s222_s14 = sshll.u32 %s215_s13, 4  ;;  %s1146_s22 = sadd.s32 4294967295, %s1006_s20   ;;  %s1143_s14 = int_to_ptr.vmem [resolvable:$true] %s222_s14 }
  0x2a   : > { %p77_p10 = scmp.ne.s32.totalorder %s990_s16, %s986_s15  ;;  %p1335_p13 = scmp.eq.s32.totalorder %s1146_s22, 0 }
  0x2b   : > { %p577_p0 = scmp.ge.s32.totalorder %s1006_s20, 1  ;;  %p161_p1 = scmp.lt.s32.totalorder %s1006_s20, 5 }
  0x2c   : > { %p1155_p2 = por %p1335_p13, %p77_p10  ;;  %s1011_s5 = smov [#allocation3]  }
  0x2d   : > { %p1159_p3 = pnand %p577_p0, %p161_p1  ;;  %s1163_s8 = sshll.u32 %s1011_s5, 4  ;;  %s177_s8 = int_to_ptr.vmem [resolvable:$true] %s1163_s8 }
  0x2e   : > { %s1339_s26 = scalar_select %p1155_p2, 1, 0 }
  0x2f   : > { %s1340_s28 = scalar_select %p1159_p3, 1, 0 }
  0x30   : > { %s864_s15 = scalar_lea.hbm %s1140_s12, 2048  ;;  %s869_s25 = scalar_lea.hbm %s1332_s2, 8192 }
  0x31   : > { %p865_p5 = scmp.ne.s32.totalorder %s1140_s12, %s864_s15  ;;  %p870_p11 = scmp.lt.u32.totalorder %s1140_s12, %s1332_s2 }
  0x32   : > { %p871_p12 = scmp.lt.u32.totalorder %s869_s25, %s864_s15  ;;  %p873_p0 = scmp.lt.u32.totalorder %s864_s15, %s1140_s12 }
  0x33   : > { %p867_p7 = pnand %p865_p5, %p836_p8 }
  0x34   : > { %p872_p10 = por %p871_p12, %p870_p11 }
  0x35   : > { %p868_p9 = pneg %p867_p7 }
  0x36   : > { %p874_p1 = por %p873_p0, %p872_p10 }
  0x38   : > { %p875_p13 = pnand %p874_p1, %p868_p9 }
  0x3a   : > { %878 = shalt.err (!%p875_p13)
}
  0x3b   : > { %s879_s11 = scalar_lea.vmem %s1143_s14, 2048  ;;  %s1012_s13 = smov [#allocation8]  }
  0x3c   : > { %p880_p5 = scmp.ne.s32.totalorder %s1143_s14, %s879_s11  ;;  %s884_s5 = sshll.u32 %s1012_s13, 4  ;;  %s885_s5 = int_to_ptr.vmem [resolvable:$false] %s884_s5 }
  0x3d   : > { %s886_s23 = scalar_lea.vmem %s885_s5, 4096  ;;  %p887_p2 = scmp.lt.s32.totalorder %s1143_s14, %s885_s5 }
  0x3e   : > { %p882_p7 = pnand %p880_p5, %p836_p8  ;;  %p888_p11 = scmp.lt.s32.totalorder %s886_s23, %s879_s11 }
  0x40   : > { %p883_p4 = pneg %p882_p7  ;;  %p889_p12 = por %p888_p11, %p887_p2 }
  0x42   : > { %p890_p10 = pnand %p889_p12, %p883_p4 }
  0x44   : > { %893 = shalt.err (!%p890_p10)
}
  0x45   : > { %773 = dma.hbm_to_vmem [thread:$0]  (!%p1097_p6), %s1140_s12, 2048, %s1143_s14, %s1104_s9, %s1009_s30, %s1009_s30, %s1010_s7  }
  0x46   : > { %p1341_p8 = scmp.eq.s32.totalorder %s1146_s22, 0  ;;  %p1342_p13 = pneg %p1159_p3 }
  0x47   : > { %s894_s25 = scalar_lea.hbm %s1330_s0, 128 }
  0x48   : > { %p1200_p9 = pnand %p1342_p13, %p1341_p8  ;;  %p895_p2 = scmp.ne.s32.totalorder %s1330_s0, %s894_s25 }
  0x49   : > { %p901_p1 = scmp.lt.u32.totalorder %s894_s25, %s1330_s0 }
  0x4a   : > { %p896_p4 = pneg %p1200_p9 }
  0x4c   : > { %p897_p6 = pnand %p896_p4, %p895_p2 }
  0x4e   : > { %p898_p0 = pneg %p897_p6 }
  0x50   : > { %p903_p5 = pnand %p901_p1, %p898_p0 }
  0x52   : > { %906 = shalt.err (!%p903_p5)
}
  0x53   : > { %s907_s7 = scalar_lea.vmem %s177_s8, 128  ;;  %p915_p10 = scmp.lt.s32.totalorder %s177_s8, %s177_s8 }
  0x54   : > { %p908_p7 = scmp.ne.s32.totalorder %s177_s8, %s907_s7  ;;  %p916_p8 = scmp.lt.s32.totalorder %s907_s7, %s907_s7 }
  0x56   : > { %p910_p11 = pnand %p908_p7, %p896_p4  ;;  %p917_p13 = por %p916_p8, %p915_p10 }
  0x58   : > { %p911_p12 = pneg %p910_p11 }
  0x5a   : > { %p918_p3 = pnand %p917_p13, %p911_p12 }
  0x5c   : > { %921 = shalt.err (!%p918_p3)
}
  0x5d   : > { %766 = dma.hbm_to_vmem [thread:$0]  (!%p1200_p9), %s1330_s0, 128, %s177_s8, [#allocation4]  }
  0x5e   : > { %p1344_p2 = scmp.ne.s32.totalorder %s1340_s28, 0 }
  0x5f   : > { %p1345_p6 = scmp.eq.s32.totalorder (!%p1344_p2), %s1146_s22, 0 }
  0x60   : > { %234 = sbr.rel (%p1344_p2) target bundleno = 612 (0x264), region = 36 }
  0x67   : > { %973 = dma.done.wait (%p1345_p6), [#allocation4], 128   ;;  %p1346_p4 = pmov %p1345_p6 }
  0x68   : > { %s240_s11 = sand.u32 1, %s1146_s22   ;;  %s242_s13 = sand.u32 1, %s990_s16  }
  0x69   : > { %975 = vsyncadd (%p1346_p4), [#allocation4], 4294967168  ;;  %s588_s5 = sshll.u32 %s242_s13, 7  ;;  %s241_s23 = scalar_lea.sflag [#allocation7], %s240_s11 }
  0x6a   : > { %s1228_s15 = scalar_lea.vmem [#allocation6], %s588_s5  ;;  %p1347_p3 = scmp.ne.s32.totalorder %s1339_s26, 0 }
  0x6c   : > { %977 = dma.done.wait (%p1347_p3), %s241_s23, 4096  }
  0x6d   : > { %979 = vsyncadd (%p1347_p3), %s241_s23, 4294963200  ;;  %s1234_s28 = scalar_lea.vmem [#allocation8], %s588_s5  ;;  %p590_p9 = scmp.ne.s32.totalorder %s998_s18, 0 }
  0x6e   : > { %v591_v0 = vld [vmem:[%s1333_s3] ss:$0 sm:$0xff] (!%p590_p9) }
  0x6f   : > { %281 = sbr.rel (%p590_p9) target bundleno = 118 (0x76), region = 52  ;;  %289 = vst [vmem:[#allocation2] sm:$0xff] (!%p590_p9), %v591_v0 }
  0x76 PF: > { %v291_v1 = vld [vmem:[%s1228_s15] sm:$0xff]  ;;  %v292_v2 = vld [vmem:[%s1228_s15 + $0x8] sm:$0xff]  ;;  %v293_v3 = vld [vmem:[%s1228_s15 + $0x10] sm:$0xff]  ;;  %v1013_v4 = vmov 0.0|0.0   ;;  %vm1014_vm0 = vmmov 0   ;;  %v1015_v7 = vmov 0.0  }
  0x77   : > { %703 = vmatprep.subr.bf16.mxu0 %v1013_v4  ;;  %v704_v5 = vpack.c.bf16 %v292_v2, %v291_v1  ;;  %v294_v6 = vld [vmem:[%s1228_s15 + $0x18] sm:$0xff]  ;;  %665 = vmatprep.mubr.msk.f32.mxu0 %vm1014_vm0, %v1015_v7  ;;  %v295_v9 = vld [vmem:[%s1228_s15 + $0x20] sm:$0xff]  ;;  %v296_v10 = vld [vmem:[%s1228_s15 + $0x28] sm:$0xff]  ;;  %p592_p0 = scmp.ne.s32.totalorder %s998_s18, 3 }
  0x78   : > { %727 = vmatprep.subr.bf16.mxu1 %v1013_v4  ;;  %700 = vmatprep.mubr.msk.f32.mxu1 %vm1014_vm0, %v1015_v7  ;;  %v707_v8 = vpack.c.bf16 %v294_v6, %v293_v3  ;;  %v378_v11 = vld [vmem:[%s1234_s28] sm:$0xff]  ;;  %v379_v12 = vld [vmem:[%s1234_s28 + $0x8] sm:$0xff]  ;;  %v380_v13 = vld [vmem:[%s1234_s28 + $0x10] sm:$0xff]  ;;  %v710_v15 = vpack.c.bf16 %v296_v10, %v295_v9 }
  0x79   : > { %705 = vmatpush3.bf16.msra.mxu0 %v704_v5  ;;  %v381_v14 = vld [vmem:[%s1234_s28 + $0x18] sm:$0xff]  ;;  %v728_v16 = vpack.c.bf16 %v379_v12, %v378_v11  ;;  %v297_v17 = vld [vmem:[%s1228_s15 + $0x30] sm:$0xff]  ;;  %v382_v20 = vld [vmem:[%s1234_s28 + $0x20] sm:$0xff] }
  0x7a   : > { %706 = vmatprep.subr.bf16.mxu0 %v1013_v4  ;;  %v298_v18 = vld [vmem:[%s1228_s15 + $0x38] sm:$0xff]  ;;  %v731_v19 = vpack.c.bf16 %v381_v14, %v380_v13  ;;  %v383_v21 = vld [vmem:[%s1234_s28 + $0x28] sm:$0xff]  ;;  %v299_v23 = vld [vmem:[%s1228_s15 + $0x40] sm:$0xff] }
  0x7b   : > { %729 = vmatpush3.bf16.msra.mxu1 %v728_v16  ;;  %v713_v22 = vpack.c.bf16 %v298_v18, %v297_v17  ;;  %v300_v24 = vld [vmem:[%s1228_s15 + $0x48] sm:$0xff]  ;;  %v734_v25 = vpack.c.bf16 %v383_v21, %v382_v20  ;;  %v384_v26 = vld [vmem:[%s1234_s28 + $0x30] sm:$0xff]  ;;  %v385_v27 = vld [vmem:[%s1234_s28 + $0x38] sm:$0xff] }
  0x7c   : > { %730 = vmatprep.subr.bf16.mxu1 %v1013_v4  ;;  %v716_v28 = vpack.c.bf16 %v300_v24, %v299_v23  ;;  %v301_v29 = vld [vmem:[%s1228_s15 + $0x50] sm:$0xff]  ;;  %v302_v30 = vld [vmem:[%s1228_s15 + $0x58] sm:$0xff]  ;;  %v737_v31 = vpack.c.bf16 %v385_v27, %v384_v26  ;;  %v386_v32 = vld [vmem:[%s1234_s28 + $0x40] sm:$0xff] }
  0x7d   : > { %708 = vmatpush3.bf16.msra.mxu0 %v707_v8  ;;  %v387_v33 = vld [vmem:[%s1234_s28 + $0x48] sm:$0xff]  ;;  %v719_v34 = vpack.c.bf16 %v302_v30, %v301_v29  ;;  %v303_v35 = vld [vmem:[%s1228_s15 + $0x60] sm:$0xff]  ;;  %v388_v38 = vld [vmem:[%s1234_s28 + $0x50] sm:$0xff] }
  0x7e   : > { %709 = vmatprep.subr.bf16.mxu0 %v1013_v4  ;;  %v304_v36 = vld [vmem:[%s1228_s15 + $0x68] sm:$0xff]  ;;  %v740_v37 = vpack.c.bf16 %v387_v33, %v386_v32  ;;  %v389_v39 = vld [vmem:[%s1234_s28 + $0x58] sm:$0xff]  ;;  %v305_v41 = vld [vmem:[%s1228_s15 + $0x70] sm:$0xff] }
  0x7f   : > { %732 = vmatpush3.bf16.msra.mxu1 %v731_v19  ;;  %v722_v40 = vpack.c.bf16 %v304_v36, %v303_v35  ;;  %v306_v42 = vld [vmem:[%s1228_s15 + $0x78] sm:$0xff]  ;;  %v743_v43 = vpack.c.bf16 %v389_v39, %v388_v38  ;;  %v390_v44 = vld [vmem:[%s1234_s28 + $0x60] sm:$0xff]  ;;  %v391_v45 = vld [vmem:[%s1234_s28 + $0x68] sm:$0xff] }
  0x80   : > { %733 = vmatprep.subr.bf16.mxu1 %v1013_v4  ;;  %v725_v46 = vpack.c.bf16 %v306_v42, %v305_v41  ;;  %v746_v47 = vpack.c.bf16 %v391_v45, %v390_v44  ;;  %v392_v48 = vld [vmem:[%s1234_s28 + $0x70] sm:$0xff]  ;;  %v393_v49 = vld [vmem:[%s1234_s28 + $0x78] sm:$0xff] }
  0x81   : > { %711 = vmatpush3.bf16.msra.mxu0 %v710_v15  ;;  %v290_v50 = vld [vmem:[#allocation3] sm:$0xff]  ;;  %v749_v51 = vpack.c.bf16 %v393_v49, %v392_v48  ;;  %v377_v54 = vld [vmem:[#allocation2] sm:$0xff] }
  0x82   : > { %712 = vmatprep.subr.bf16.mxu0 %v1013_v4 }
  0x83   : > { %735 = vmatpush3.bf16.msra.mxu1 %v734_v25 }
  0x84   : > { %736 = vmatprep.subr.bf16.mxu1 %v1013_v4 }
  0x85   : > { %714 = vmatpush3.bf16.msra.mxu0 %v713_v22 }
  0x86   : > { %715 = vmatprep.subr.bf16.mxu0 %v1013_v4 }
  0x87   : > { %738 = vmatpush3.bf16.msra.mxu1 %v737_v31 }
  0x88   : > { %739 = vmatprep.subr.bf16.mxu1 %v1013_v4 }
  0x89   : > { %717 = vmatpush3.bf16.msra.mxu0 %v716_v28 }
  0x8a   : > { %718 = vmatprep.subr.bf16.mxu0 %v1013_v4 }
  0x8b   : > { %741 = vmatpush3.bf16.msra.mxu1 %v740_v37 }
  0x8c   : > { %742 = vmatprep.subr.bf16.mxu1 %v1013_v4 }
  0x8d   : > { %720 = vmatpush3.bf16.msra.mxu0 %v719_v34 }
  0x8e   : > { %721 = vmatprep.subr.bf16.mxu0 %v1013_v4 }
  0x8f   : > { %744 = vmatpush3.bf16.msra.mxu1 %v743_v43 }
  0x90   : > { %745 = vmatprep.subr.bf16.mxu1 %v1013_v4 }
  0x91   : > { %723 = vmatpush3.bf16.msra.mxu0 %v722_v40 }
  0x92   : > { %724 = vmatprep.subr.bf16.mxu0 %v1013_v4 }
  0x93   : > { %747 = vmatpush3.bf16.msra.mxu1 %v746_v47 }
  0x94   : > { %748 = vmatprep.subr.bf16.mxu1 %v1013_v4 }
  0x95   : > { %726 = vmatpush3.bf16.msra.mxu0 %v725_v46 }
  0x97   : > { %750 = vmatpush3.bf16.msra.mxu1 %v749_v51 }
  0x98   : > { %666 = vmatmul.mubr.f32.vlgmr.msra.gmra.mrb[0].mxu0 %v290_v50 }
 0x16b   : > { %v373_v52 = vpop.f32.mrb[0].mxu0 }
 0x16c   : > { %v667_v53 = vpop.f32.mrb[1].mxu0  ;;  %701 = vmatmul.mubr.f32.vlgmr.msra.gmra.mrb[0].mxu1 %v373_v52 }
 0x23c   : > { %469 = sbr.rel (%p592_p0) target bundleno = 587 (0x24b), region = 56 }
 0x23f   : > { %v460_v55 = vpop.f32.mrb[0].mxu1 }
 0x240   : > { %v464_v56 = vadd.f32 %v460_v55, %v377_v54  ;;  %v702_v57 = vpop.f32.mrb[1].mxu1 }
 0x242   : > { %465 = vst [vmem:[#allocation2] sm:$0xff] %v464_v56 }
 0x249   : > { %v470_v58 = vld [vmem:[#allocation2] sm:$0xff] }
 0x24a   : > { %471 = vst [vmem:[#allocation9] sm:$0xff] %v470_v58 }
 0x24b PF: > { %p777_p1 = scmp.eq.s32.totalorder %s1146_s22, 3  ;;  %s1016_s26 = smov [#allocation9]  }
 0x24c   : > { %s481_s6 = sshll.u32 %s1016_s26, 4  ;;  %s482_s6 = int_to_ptr.vmem [resolvable:$true] %s481_s6 }
 0x24d   : > { %s922_s25 = scalar_lea.vmem %s482_s6, 128  ;;  %p929_p12 = scmp.lt.s32.totalorder %s482_s6, %s482_s6 }
 0x24e   : > { %p923_p5 = scmp.ne.s32.totalorder %s482_s6, %s922_s25  ;;  %p930_p10 = scmp.lt.s32.totalorder %s922_s25, %s922_s25 }
 0x250   : > { %p924_p7 = pnand %p923_p5, %p777_p1  ;;  %p931_p8 = por %p930_p10, %p929_p12 }
 0x252   : > { %p925_p11 = pneg %p924_p7 }
 0x254   : > { %p932_p13 = pnand %p931_p8, %p925_p11 }
 0x256   : > { %935 = shalt.err (!%p932_p13)
}
 0x257   : > { %s936_s10 = scalar_lea.hbm %s1334_s4, 128 }
 0x258   : > { %p937_p2 = scmp.ne.s32.totalorder %s1334_s4, %s936_s10  ;;  %p942_p3 = scmp.lt.u32.totalorder %s936_s10, %s1334_s4 }
 0x25a   : > { %p938_p6 = pnand %p937_p2, %p777_p1 }
 0x25c   : > { %p939_p4 = pneg %p938_p6 }
 0x25e   : > { %p944_p9 = pnand %p942_p3, %p939_p4 }
 0x260   : > { %947 = shalt.err (!%p944_p9)
}
 0x261   : > { %760 = dma.vmem_to_hbm [thread:$0]  (%p777_p1), %s482_s6, 128, %s1334_s4, [#allocation5]  }
 0x262   : > { %981 = dma.done.wait (%p777_p1), [#allocation5], 128  }
 0x263   : > { %983 = vsyncadd (%p777_p1), [#allocation5], 4294967168 }
 0x264 PF: > { %s19_s20 = sadd.s32 1, %s1006_s20   ;;  %s1348_s15 = smov %s990_s16 }
 0x265   : > { %p16_p0 = scmp.ge.s32.totalorder %s19_s20, 6   ;;  %s1349_s16 = smov %s994_s17 }
 0x266   : > { %s1350_s17 = smov %s1086_s27  ;;  %s1351_s18 = smov %s1002_s19 }
 0x267   : > { %s1352_s19 = smov %s1354_s21  ;;  %18 = sbr.rel (!%p16_p0) target bundleno = 6 (0x6), region = 99 }
 0x26e   :  { %494 = vsyncpa [#allocation4], 1 }
 0x26f   :  { %496 = vsyncpa [#allocation4 + $0x1], 1 }
 0x270   :  { %497 = vsyncpa [#allocation7], 1 }
 0x271   :  { %499 = vsyncpa [#allocation7 + $0x1], 1 }
 0x272   :  { %500 = vsyncpa [#allocation5], 1 }
 0x273   :  { %502 = vsyncpa [#allocation5 + $0x1], 1 }

</bundles_post_ra>
